<compile_context>
chip_gen: v5e
topology: v5e:2x2
jax: 0.10.0
libtpu: 0.0.40
codegen_flags: <defaults>
</compile_context>

<pallas_src>
import functools

import jax
import jax.numpy as jnp
from jax.experimental import pallas as pl


def _make_decoder_kernel(n_layers, hidden_dim, use_inter_masks):
    H = hidden_dim

    def kernel(x_ref, h_ref, c_ref, in_mask_ref, *refs):
        idx = 0
        if use_inter_masks:
            lmask_ref = refs[idx]
            idx += 1
        layer_refs = refs[idx:idx + 2 * n_layers]
        idx += 2 * n_layers
        wout_ref, bout_ref, pred_ref, hout_ref, cout_ref = refs[idx:idx + 5]

        # Read the full state once, up front: hidden/cells are aliased to the
        # state outputs, so all reads happen before any write.
        hs = h_ref[...]        # (L, B, H)
        cs = c_ref[...]        # (L, B, H)

        # self.dropout(self.embedding_process(input)); mask is pre-scaled by 1/keep.
        inp = x_ref[...] * in_mask_ref[...]

        for l in range(n_layers):
            w_cat = layer_refs[2 * l][...]      # (in_dim + H, 4H), gate order [i,f,o,g]
            b = layer_refs[2 * l + 1][...]      # (1, 4H)
            h = hs[l]                           # (B, H)
            c = cs[l]                           # (B, H)

            # Single fused MXU contraction: [x, h] @ [W_ih^T ; W_hh^T].
            xh = jnp.concatenate([inp, h], axis=1)
            gates = jnp.dot(xh.astype(w_cat.dtype), w_cat,
                            preferred_element_type=jnp.float32) + b   # (B, 4H)

            # One sigmoid over the contiguous [i, f, o] slab, one tanh for g.
            sig = jax.nn.sigmoid(gates[:, :3 * H])
            i_g = sig[:, 0:H]
            f_g = sig[:, H:2 * H]
            o_g = sig[:, 2 * H:3 * H]
            g_g = jnp.tanh(gates[:, 3 * H:4 * H])

            c_new = f_g * c + i_g * g_g
            h_new = o_g * jnp.tanh(c_new)

            hout_ref[l] = h_new
            cout_ref[l] = c_new

            inp = h_new
            if use_inter_masks and l < n_layers - 1:
                # nn.LSTM inter-layer dropout (all but the last layer's output).
                inp = inp * lmask_ref[l]

        # self.final_out(output.squeeze(0))
        pred_ref[...] = (jnp.dot(inp.astype(wout_ref.dtype), wout_ref[...],
                                 preferred_element_type=jnp.float32)
                         + bout_ref[...])

    return kernel


def init_params(key, output_dim, embedding_dim, hidden_dim, n_layers):
    ks = jax.random.split(key, 3 + 4 * n_layers)
    k = 1.0 / jnp.sqrt(hidden_dim)
    params = {
        "embedding": jax.random.normal(ks[0], (output_dim, embedding_dim),
                                       jnp.float32),
        "w_out": jax.random.uniform(ks[1], (output_dim, hidden_dim),
                                    jnp.float32, -k, k),
        "b_out": jax.random.uniform(ks[2], (output_dim,), jnp.float32, -k, k),
        "lstm": [],
    }
    for l in range(n_layers):
        in_dim = embedding_dim if l == 0 else hidden_dim
        base = 3 + 4 * l
        params["lstm"].append({
            "w_ih": jax.random.uniform(ks[base + 0], (4 * hidden_dim, in_dim),
                                       jnp.float32, -k, k),
            "w_hh": jax.random.uniform(ks[base + 1], (4 * hidden_dim, hidden_dim),
                                       jnp.float32, -k, k),
            "b_ih": jax.random.uniform(ks[base + 2], (4 * hidden_dim,),
                                       jnp.float32, -k, k),
            "b_hh": jax.random.uniform(ks[base + 3], (4 * hidden_dim,),
                                       jnp.float32, -k, k),
        })
    return params


def prepare_decoder_params(params, matmul_dtype=jnp.float32):
    """One-time weight preparation (hoisted out of the per-step decode path).

    Transposes W_ih / W_hh / W_out, concatenates [W_ih^T ; W_hh^T] per layer,
    combines b_ih + b_hh, and reorders gate columns [i,f,g,o] -> [i,f,o,g].
    Set matmul_dtype=jnp.bfloat16 on v6e/v7x to halve weight DMA and MXU passes
    (accumulation stays float32 in-kernel); default float32 matches PyTorch.
    """
    def reorder_gates(w):   # last axis is 4H in PyTorch order [i, f, g, o]
        i, f, g, o = jnp.split(w, 4, axis=-1)
        return jnp.concatenate([i, f, o, g], axis=-1)

    layers = []
    for layer in params["lstm"]:
        w_cat = jnp.concatenate([layer["w_ih"].T, layer["w_hh"].T], axis=0)
        b = (layer["b_ih"] + layer["b_hh"]).reshape(1, -1)
        layers.append({"w_cat": reorder_gates(w_cat).astype(matmul_dtype),
                       "b": reorder_gates(b).astype(jnp.float32)})
    return {
        "embedding": params["embedding"],
        "layers": layers,
        "w_out_t": params["w_out"].T.astype(matmul_dtype),
        "b_out": params["b_out"].reshape(1, -1).astype(jnp.float32),
    }


@functools.partial(jax.jit, static_argnames=("drop_p", "training"))
def decoder_forward(prepared, tokens, hidden, cells, dropout_key,
                    drop_p=0.5, training=True):
    L, B, H = hidden.shape
    E = prepared["embedding"].shape[1]
    O = prepared["w_out_t"].shape[1]

    # Embedding gather (input.unsqueeze(0) -> nn.Embedding); seq dim of size 1 squeezed.
    # TODO(synk): for large vocabularies, fuse this gather into the kernel
    # (scalar-prefetch tokens + manual row DMA) instead of a wrapper-side jnp.take.
    emb = jnp.take(prepared["embedding"], tokens, axis=0)        # (B, E)

    # Dropout masks drawn up front (pre-scaled by 1/keep).  Done in the wrapper with
    # jax.random: portable (no TPU-only PRNG primitive) and the keep probability
    # always matches the scale for any drop_p.
    keep = 1.0 - drop_p
    if training and drop_p > 0.0:
        k_in, k_layers = jax.random.split(dropout_key)
        in_mask = jax.random.bernoulli(k_in, keep, (B, E)).astype(jnp.float32) / keep
        if L > 1:
            layer_masks = (jax.random.bernoulli(k_layers, keep, (L - 1, B, H))
                           .astype(jnp.float32) / keep)
    else:
        in_mask = jnp.ones((B, E), jnp.float32)
        if L > 1:
            layer_masks = jnp.ones((L - 1, B, H), jnp.float32)

    args = [emb, hidden, cells, in_mask]
    if L > 1:
        args.append(layer_masks)
    for layer in prepared["layers"]:
        args += [layer["w_cat"], layer["b"]]
    args += [prepared["w_out_t"], prepared["b_out"]]

    kernel = _make_decoder_kernel(L, H, use_inter_masks=(L > 1))

    # No grid: one kernel invocation, every operand as a whole-array VMEM block
    # (total footprint ~1.3 MB at these shapes, far under any TPU's VMEM).
    # hidden/cells inputs (arg indices 1, 2) alias the state outputs (1, 2).
    pred, h_new, c_new = pl.pallas_call(
        kernel,
        out_shape=(jax.ShapeDtypeStruct((B, O), jnp.float32),
                   jax.ShapeDtypeStruct((L, B, H), jnp.float32),
                   jax.ShapeDtypeStruct((L, B, H), jnp.float32)),
        input_output_aliases={1: 1, 2: 2},
    )(*args)

    return pred, h_new, c_new


if __name__ == "__main__":
    OUTPUT_DIM = 128    # vocab size
    EMB_DIM = 128
    HID_DIM = 128
    N_LAYERS = 2
    BATCH = 8

    key = jax.random.PRNGKey(0)
    kp, kt, kh, kc, kd = jax.random.split(key, 5)

    params = init_params(kp, OUTPUT_DIM, EMB_DIM, HID_DIM, N_LAYERS)
    prepared = prepare_decoder_params(params)   # one-time weight prep (off hot path)

    tokens = jax.random.randint(kt, (BATCH,), 0, OUTPUT_DIM, dtype=jnp.int32)
    hidden = 0.1 * jax.random.normal(kh, (N_LAYERS, BATCH, HID_DIM), jnp.float32)
    cells = 0.1 * jax.random.normal(kc, (N_LAYERS, BATCH, HID_DIM), jnp.float32)

    pred, h_new, c_new = decoder_forward(prepared, tokens, hidden, cells, kd)
    jax.block_until_ready((pred, h_new, c_new))

    assert pred.shape == (BATCH, OUTPUT_DIM)
    assert h_new.shape == (N_LAYERS, BATCH, HID_DIM)
    assert c_new.shape == (N_LAYERS, BATCH, HID_DIM)
    assert bool(jnp.all(jnp.isfinite(pred)))
    assert bool(jnp.all(jnp.isfinite(h_new)))
    assert bool(jnp.all(jnp.isfinite(c_new)))

    print("KERNEL_OK")
</pallas_src>

<mosaic_0001>
module attributes {stable_mosaic.version = 11 : i64} {
  func.func @kernel(%arg0: memref<8x128xf32, #tpu.memory_space<vmem>>, %arg1: memref<2x8x128xf32, #tpu.memory_space<vmem>>, %arg2: memref<2x8x128xf32, #tpu.memory_space<vmem>>, %arg3: memref<8x128xf32, #tpu.memory_space<vmem>>, %arg4: memref<1x8x128xf32, #tpu.memory_space<vmem>>, %arg5: memref<256x512xf32, #tpu.memory_space<vmem>>, %arg6: memref<1x512xf32, #tpu.memory_space<vmem>>, %arg7: memref<256x512xf32, #tpu.memory_space<vmem>>, %arg8: memref<1x512xf32, #tpu.memory_space<vmem>>, %arg9: memref<128x128xf32, #tpu.memory_space<vmem>>, %arg10: memref<1x128xf32, #tpu.memory_space<vmem>>, %arg11: memref<8x128xf32, #tpu.memory_space<vmem>>, %arg12: memref<2x8x128xf32, #tpu.memory_space<vmem>>, %arg13: memref<2x8x128xf32, #tpu.memory_space<vmem>>) attributes {dimension_semantics = [], scalar_prefetch = 0 : i64, scratch_operands = 0 : i64, tpu.core_type = #tpu.core_type<tc>} {
    %c0 = arith.constant 0 : index
    %c0_0 = arith.constant 0 : index
    %c0_1 = arith.constant 0 : index
    %0 = vector.load %arg1[%c0, %c0_0, %c0_1] : memref<2x8x128xf32, #tpu.memory_space<vmem>>, vector<2x8x128xf32>
    %c0_2 = arith.constant 0 : index
    %c0_3 = arith.constant 0 : index
    %c0_4 = arith.constant 0 : index
    %1 = vector.load %arg2[%c0_2, %c0_3, %c0_4] : memref<2x8x128xf32, #tpu.memory_space<vmem>>, vector<2x8x128xf32>
    %c0_5 = arith.constant 0 : index
    %c0_6 = arith.constant 0 : index
    %2 = vector.load %arg0[%c0_5, %c0_6] : memref<8x128xf32, #tpu.memory_space<vmem>>, vector<8x128xf32>
    %c0_7 = arith.constant 0 : index
    %c0_8 = arith.constant 0 : index
    %3 = vector.load %arg3[%c0_7, %c0_8] : memref<8x128xf32, #tpu.memory_space<vmem>>, vector<8x128xf32>
    %4 = arith.mulf %2, %3 : vector<8x128xf32>
    %c0_9 = arith.constant 0 : index
    %c0_10 = arith.constant 0 : index
    %5 = vector.load %arg5[%c0_9, %c0_10] : memref<256x512xf32, #tpu.memory_space<vmem>>, vector<256x512xf32>
    %c0_11 = arith.constant 0 : index
    %c0_12 = arith.constant 0 : index
    %6 = vector.load %arg6[%c0_11, %c0_12] : memref<1x512xf32, #tpu.memory_space<vmem>>, vector<1x512xf32>
    %7 = vector.extract_strided_slice %0 {offsets = [0, 0, 0], sizes = [1, 8, 128], strides = [1, 1, 1]} : vector<2x8x128xf32> to vector<1x8x128xf32>
    %8 = vector.shape_cast %7 : vector<1x8x128xf32> to vector<8x128xf32>
    %9 = vector.extract_strided_slice %1 {offsets = [0, 0, 0], sizes = [1, 8, 128], strides = [1, 1, 1]} : vector<2x8x128xf32> to vector<1x8x128xf32>
    %10 = vector.shape_cast %9 : vector<1x8x128xf32> to vector<8x128xf32>
    %11 = tpu.concatenate %4, %8 in 1 : vector<8x128xf32>, vector<8x128xf32> -> vector<8x256xf32>
    %cst = arith.constant dense<0.000000e+00> : vector<8x512xf32>
    %12 = tpu.matmul %11, %5, %cst {dimension_numbers = #tpu.dot_dimension_numbers<[1], [0], [0], [1], [0, 0, 1, 1], [], []>} : vector<8x256xf32>, vector<256x512xf32>, vector<8x512xf32> -> vector<8x512xf32>
    %13 = vector.broadcast %6 : vector<1x512xf32> to vector<8x512xf32>
    %14 = arith.addf %12, %13 : vector<8x512xf32>
    %15 = vector.extract_strided_slice %14 {offsets = [0, 0], sizes = [8, 384], strides = [1, 1]} : vector<8x512xf32> to vector<8x384xf32>
    %16 = arith.negf %15 : vector<8x384xf32>
    %17 = math.exp %16 : vector<8x384xf32>
    %cst_13 = arith.constant 1.000000e+00 : f32
    %18 = vector.broadcast %cst_13 : f32 to vector<8x384xf32>
    %19 = arith.addf %18, %17 : vector<8x384xf32>
    %20 = arith.divf %18, %19 : vector<8x384xf32>
    %21 = vector.extract_strided_slice %20 {offsets = [0, 0], sizes = [8, 128], strides = [1, 1]} : vector<8x384xf32> to vector<8x128xf32>
    %22 = vector.extract_strided_slice %20 {offsets = [0, 128], sizes = [8, 128], strides = [1, 1]} : vector<8x384xf32> to vector<8x128xf32>
    %23 = vector.extract_strided_slice %20 {offsets = [0, 256], sizes = [8, 128], strides = [1, 1]} : vector<8x384xf32> to vector<8x128xf32>
    %24 = vector.extract_strided_slice %14 {offsets = [0, 384], sizes = [8, 128], strides = [1, 1]} : vector<8x512xf32> to vector<8x128xf32>
    %25 = math.tanh %24 : vector<8x128xf32>
    %26 = arith.mulf %22, %10 : vector<8x128xf32>
    %27 = arith.mulf %21, %25 : vector<8x128xf32>
    %28 = arith.addf %26, %27 : vector<8x128xf32>
    %29 = math.tanh %28 : vector<8x128xf32>
    %30 = arith.mulf %23, %29 : vector<8x128xf32>
    %c0_14 = arith.constant 0 : index
    %c0_15 = arith.constant 0 : index
    %c0_16 = arith.constant 0 : index
    %31 = vector.load %arg12[%c0_14, %c0_15, %c0_16] : memref<2x8x128xf32, #tpu.memory_space<vmem>>, vector<1x8x128xf32>
    %32 = vector.shape_cast %31 : vector<1x8x128xf32> to vector<8x128xf32>
    %33 = vector.shape_cast %30 : vector<8x128xf32> to vector<1x8x128xf32>
    tpu.vector_store %arg12[%c0_14, %c0_15, %c0_16], %33 {strides = array<i32>} : memref<2x8x128xf32, #tpu.memory_space<vmem>>, vector<1x8x128xf32>,
    %c0_17 = arith.constant 0 : index
    %c0_18 = arith.constant 0 : index
    %c0_19 = arith.constant 0 : index
    %34 = vector.load %arg13[%c0_17, %c0_18, %c0_19] : memref<2x8x128xf32, #tpu.memory_space<vmem>>, vector<1x8x128xf32>
    %35 = vector.shape_cast %34 : vector<1x8x128xf32> to vector<8x128xf32>
    %36 = vector.shape_cast %28 : vector<8x128xf32> to vector<1x8x128xf32>
    tpu.vector_store %arg13[%c0_17, %c0_18, %c0_19], %36 {strides = array<i32>} : memref<2x8x128xf32, #tpu.memory_space<vmem>>, vector<1x8x128xf32>,
    %c0_20 = arith.constant 0 : index
    %c0_21 = arith.constant 0 : index
    %c0_22 = arith.constant 0 : index
    %37 = vector.load %arg4[%c0_20, %c0_21, %c0_22] : memref<1x8x128xf32, #tpu.memory_space<vmem>>, vector<1x8x128xf32>
    %38 = vector.shape_cast %37 : vector<1x8x128xf32> to vector<8x128xf32>
    %39 = arith.mulf %30, %38 : vector<8x128xf32>
    %c0_23 = arith.constant 0 : index
    %c0_24 = arith.constant 0 : index
    %40 = vector.load %arg7[%c0_23, %c0_24] : memref<256x512xf32, #tpu.memory_space<vmem>>, vector<256x512xf32>
    %c0_25 = arith.constant 0 : index
    %c0_26 = arith.constant 0 : index
    %41 = vector.load %arg8[%c0_25, %c0_26] : memref<1x512xf32, #tpu.memory_space<vmem>>, vector<1x512xf32>
    %42 = vector.extract_strided_slice %0 {offsets = [1, 0, 0], sizes = [1, 8, 128], strides = [1, 1, 1]} : vector<2x8x128xf32> to vector<1x8x128xf32>
    %43 = vector.shape_cast %42 : vector<1x8x128xf32> to vector<8x128xf32>
    %44 = vector.extract_strided_slice %1 {offsets = [1, 0, 0], sizes = [1, 8, 128], strides = [1, 1, 1]} : vector<2x8x128xf32> to vector<1x8x128xf32>
    %45 = vector.shape_cast %44 : vector<1x8x128xf32> to vector<8x128xf32>
    %46 = tpu.concatenate %39, %43 in 1 : vector<8x128xf32>, vector<8x128xf32> -> vector<8x256xf32>
    %cst_27 = arith.constant dense<0.000000e+00> : vector<8x512xf32>
    %47 = tpu.matmul %46, %40, %cst_27 {dimension_numbers = #tpu.dot_dimension_numbers<[1], [0], [0], [1], [0, 0, 1, 1], [], []>} : vector<8x256xf32>, vector<256x512xf32>, vector<8x512xf32> -> vector<8x512xf32>
    %48 = vector.broadcast %41 : vector<1x512xf32> to vector<8x512xf32>
    %49 = arith.addf %47, %48 : vector<8x512xf32>
    %50 = vector.extract_strided_slice %49 {offsets = [0, 0], sizes = [8, 384], strides = [1, 1]} : vector<8x512xf32> to vector<8x384xf32>
    %51 = arith.negf %50 : vector<8x384xf32>
    %52 = math.exp %51 : vector<8x384xf32>
    %cst_28 = arith.constant 1.000000e+00 : f32
    %53 = vector.broadcast %cst_28 : f32 to vector<8x384xf32>
    %54 = arith.addf %53, %52 : vector<8x384xf32>
    %55 = arith.divf %53, %54 : vector<8x384xf32>
    %56 = vector.extract_strided_slice %55 {offsets = [0, 0], sizes = [8, 128], strides = [1, 1]} : vector<8x384xf32> to vector<8x128xf32>
    %57 = vector.extract_strided_slice %55 {offsets = [0, 128], sizes = [8, 128], strides = [1, 1]} : vector<8x384xf32> to vector<8x128xf32>
    %58 = vector.extract_strided_slice %55 {offsets = [0, 256], sizes = [8, 128], strides = [1, 1]} : vector<8x384xf32> to vector<8x128xf32>
    %59 = vector.extract_strided_slice %49 {offsets = [0, 384], sizes = [8, 128], strides = [1, 1]} : vector<8x512xf32> to vector<8x128xf32>
    %60 = math.tanh %59 : vector<8x128xf32>
    %61 = arith.mulf %57, %45 : vector<8x128xf32>
    %62 = arith.mulf %56, %60 : vector<8x128xf32>
    %63 = arith.addf %61, %62 : vector<8x128xf32>
    %64 = math.tanh %63 : vector<8x128xf32>
    %65 = arith.mulf %58, %64 : vector<8x128xf32>
    %c1 = arith.constant 1 : index
    %c0_29 = arith.constant 0 : index
    %c0_30 = arith.constant 0 : index
    %66 = vector.load %arg12[%c1, %c0_29, %c0_30] : memref<2x8x128xf32, #tpu.memory_space<vmem>>, vector<1x8x128xf32>
    %67 = vector.shape_cast %66 : vector<1x8x128xf32> to vector<8x128xf32>
    %68 = vector.shape_cast %65 : vector<8x128xf32> to vector<1x8x128xf32>
    tpu.vector_store %arg12[%c1, %c0_29, %c0_30], %68 {strides = array<i32>} : memref<2x8x128xf32, #tpu.memory_space<vmem>>, vector<1x8x128xf32>,
    %c1_31 = arith.constant 1 : index
    %c0_32 = arith.constant 0 : index
    %c0_33 = arith.constant 0 : index
    %69 = vector.load %arg13[%c1_31, %c0_32, %c0_33] : memref<2x8x128xf32, #tpu.memory_space<vmem>>, vector<1x8x128xf32>
    %70 = vector.shape_cast %69 : vector<1x8x128xf32> to vector<8x128xf32>
    %71 = vector.shape_cast %63 : vector<8x128xf32> to vector<1x8x128xf32>
    tpu.vector_store %arg13[%c1_31, %c0_32, %c0_33], %71 {strides = array<i32>} : memref<2x8x128xf32, #tpu.memory_space<vmem>>, vector<1x8x128xf32>,
    %c0_34 = arith.constant 0 : index
    %c0_35 = arith.constant 0 : index
    %72 = vector.load %arg9[%c0_34, %c0_35] : memref<128x128xf32, #tpu.memory_space<vmem>>, vector<128x128xf32>
    %cst_36 = arith.constant dense<0.000000e+00> : vector<8x128xf32>
    %73 = tpu.matmul %65, %72, %cst_36 {dimension_numbers = #tpu.dot_dimension_numbers<[1], [0], [0], [1], [0, 0, 1, 1], [], []>} : vector<8x128xf32>, vector<128x128xf32>, vector<8x128xf32> -> vector<8x128xf32>
    %c0_37 = arith.constant 0 : index
    %c0_38 = arith.constant 0 : index
    %74 = vector.load %arg10[%c0_37, %c0_38] : memref<1x128xf32, #tpu.memory_space<vmem>>, vector<1x128xf32>
    %75 = vector.broadcast %74 : vector<1x128xf32> to vector<8x128xf32>
    %76 = arith.addf %73, %75 : vector<8x128xf32>
    %c0_39 = arith.constant 0 : index
    %c0_40 = arith.constant 0 : index
    %77 = vector.load %arg11[%c0_39, %c0_40] : memref<8x128xf32, #tpu.memory_space<vmem>>, vector<8x128xf32>
    tpu.vector_store %arg11[%c0_39, %c0_40], %76 {strides = array<i32>} : memref<8x128xf32, #tpu.memory_space<vmem>>, vector<8x128xf32>,
    return
  }
}

</mosaic_0001>

<bundles_post_ra>
// kernel: decoder_forward.1
= control target key start
LH: loop header
LB: loop body
LE: loop exit
PB: predicated region body
PF: predicated region fallthrough
CT: control target
= control target key end

     0   :  { %19 = vsyncpa [#allocation3], 0  ;;  %s1430_s0 = inlined_call_operand.vmem [shape: f32[8,128], index: 0, kind: input, shape index: {}]   ;;  %s1431_s1 = inlined_call_operand.hbm [shape: f32[2,8,128], index: 1, kind: input, shape index: {}, may-alias: {1,12}]   ;;  %s1432_s2 = inlined_call_operand.hbm [shape: f32[2,8,128], index: 2, kind: input, shape index: {}, may-alias: {2,13}]   ;;  %s1433_s3 = inlined_call_operand.vmem [shape: f32[8,128], index: 3, kind: input, shape index: {}]   ;;  %s1434_s4 = inlined_call_operand.vmem [shape: f32[1,8,128], index: 4, kind: input, shape index: {}]   ;;  %s1435_s5 = inlined_call_operand.hbm [shape: f32[256,512], index: 5, kind: input, shape index: {}]   ;;  %s1436_s6 = inlined_call_operand.vmem [shape: f32[1,512], index: 6, kind: input, shape index: {}]   ;;  %s1437_s7 = inlined_call_operand.hbm [shape: f32[256,512], index: 7, kind: input, shape index: {}]   ;;  %s1438_s8 = inlined_call_operand.vmem [shape: f32[1,512], index: 8, kind: input, shape index: {}]   ;;  %s1439_s9 = inlined_call_operand.vmem [shape: f32[128,128], index: 9, kind: input, shape index: {}]   ;;  %s1440_s10 = inlined_call_operand.vmem [shape: f32[1,128], index: 10, kind: input, shape index: {}]   ;;  %s1441_s11 = inlined_call_operand.hbm [shape: f32[8,128], index: 11, kind: output, shape index: {0}]   ;;  %s1442_s12 = inlined_call_operand.hbm [shape: f32[2,8,128], index: 12, kind: output, shape index: {1}, may-alias: {1,12}]   ;;  %s1443_s13 = inlined_call_operand.hbm [shape: f32[2,8,128], index: 13, kind: output, shape index: {2}, may-alias: {2,13}]  }
   0x1   :  { %20 = vsyncpa [#allocation6], 0 }
   0x2   :  { %21 = vsyncpa [#allocation9], 0 }
   0x3   :  { %22 = vsyncpa [#allocation4], 0 }
   0x4   :  { %23 = vsyncpa [#allocation12], 0  ;;  %s43_s27 = sshll.u32 %s1432_s2, 4  ;;  %s1166_s28 = smov [#allocation5]   ;;  %s44_s27 = int_to_ptr.hbm [resolvable:$true] %s43_s27 }
   0x5   :  { %s45_s29 = sshll.u32 %s1166_s28, 4  ;;  %s30_s15 = sshll.u32 %s1431_s1, 4  ;;  %s46_s29 = int_to_ptr.vmem [resolvable:$true] %s45_s29  ;;  %s31_s15 = int_to_ptr.hbm [resolvable:$true] %s30_s15 }
   0x6   :  { %s1167_s16 = smov 128   ;;  %s1168_s17 = smov 8  }
   0x7   :  { %51 = dma.hbm_to_vmem [thread:$0]  %s44_s27, 256, %s46_s29, [#allocation6], %s1167_s16, %s1167_s16, %s1168_s17  }
   0x8   :  { %s1169_s18 = smov [#allocation2]   ;;  %s60_s2 = sshll.u32 %s1435_s5, 4  ;;  %s61_s2 = int_to_ptr.hbm [resolvable:$true] %s60_s2 }
   0x9   :  { %s32_s19 = sshll.u32 %s1169_s18, 4  ;;  %s1170_s1 = smov [#allocation7]   ;;  %s33_s19 = int_to_ptr.vmem [resolvable:$true] %s32_s19 }
   0xa   :  { %38 = dma.hbm_to_vmem [thread:$0]  %s31_s15, 256, %s33_s19, [#allocation3], %s1167_s16, %s1167_s16, %s1168_s17  }
   0xb   :  { %s62_s22 = sshll.u32 %s1170_s1, 4  ;;  %s75_s25 = sshll.u32 %s1437_s7, 4  ;;  %s63_s22 = int_to_ptr.vmem [resolvable:$true] %s62_s22  ;;  %s76_s25 = int_to_ptr.hbm [resolvable:$true] %s75_s25 }
   0xc   :  { %s1171_s26 = smov 512   ;;  %s1172_s27 = smov 32  }
   0xd   :  { %68 = dma.hbm_to_vmem [thread:$0]  %s61_s2, 16384, %s63_s22, [#allocation6], %s1171_s26, %s1171_s26, %s1172_s27  }
   0xe   :  { %s1173_s28 = smov [#allocation8]  }
   0xf   :  { %s77_s29 = sshll.u32 %s1173_s28, 4  ;;  %s78_s29 = int_to_ptr.vmem [resolvable:$true] %s77_s29 }
  0x10   :  { %83 = dma.hbm_to_vmem [thread:$0]  %s76_s25, 16384, %s78_s29, [#allocation9], %s1171_s26, %s1171_s26, %s1172_s27  }
  0x11   :  { %1156 = dma.done.wait [#allocation3], 256  }
  0x12   :  { %1157 = vsyncadd [#allocation3], 4294967040 }
  0x13   :  { %1158 = dma.done.wait [#allocation6], 16640  }
  0x14   :  { %1159 = vsyncadd [#allocation6], 4294950656 }
  0x15   :  { %1160 = dma.done.wait [#allocation9], 16384  }
  0x16   :  { %1161 = vsyncadd [#allocation9], 4294950912  ;;  %v173_v0 = vld [vmem:[#allocation7 + $0x1e0] sm:$0xff]  ;;  %v174_v1 = vld [vmem:[#allocation7 + $0x1e8] sm:$0xff]  ;;  %s901_s28 = sshll.u32 %s1442_s12, 4  ;;  %s914_s30 = sshll.u32 %s1443_s13, 4  ;;  %s902_s28 = int_to_ptr.hbm [resolvable:$true] %s901_s28  ;;  %s915_s30 = int_to_ptr.hbm [resolvable:$true] %s914_s30 }
  0x17   :  { %v169_v2 = vld [vmem:[#allocation7 + $0x1c0] sm:$0xff]  ;;  %251 = vmatpush.msra.mxu0 %v173_v0  ;;  %291 = vmatpush.msra.mxu2 %v174_v1  ;;  %v170_v4 = vld [vmem:[#allocation7 + $0x1c8] sm:$0xff]  ;;  %v175_v0 = vld [vmem:[#allocation7 + $0x1f0] sm:$0xff]  ;;  %s891_s18 = sshll.u32 %s1441_s11, 4  ;;  %s892_s18 = int_to_ptr.hbm [resolvable:$true] %s891_s18 }
  0x18   :  { %v237_v3 = vld [vmem:[#allocation7 + $0x3e0] sm:$0xff]  ;;  %v238_v5 = vld [vmem:[#allocation7 + $0x3e8] sm:$0xff]  ;;  %v176_v1 = vld [vmem:[#allocation7 + $0x1f8] sm:$0xff] }
  0x19   :  { %271 = vmatpush.msra.mxu1 %v237_v3  ;;  %311 = vmatpush.msra.mxu3 %v238_v5  ;;  %v165_v6 = vld [vmem:[#allocation7 + $0x1a0] sm:$0xff]  ;;  %v166_v8 = vld [vmem:[#allocation7 + $0x1a8] sm:$0xff]  ;;  %v171_v5 = vld [vmem:[#allocation7 + $0x1d0] sm:$0xff] }
  0x1a   :  { %v233_v7 = vld [vmem:[#allocation7 + $0x3c0] sm:$0xff]  ;;  %252 = vmatpush.msra.mxu0 %v169_v2  ;;  %292 = vmatpush.msra.mxu2 %v170_v4  ;;  %v234_v9 = vld [vmem:[#allocation7 + $0x3c8] sm:$0xff] }
  0x1b   :  { %v229_v10 = vld [vmem:[#allocation7 + $0x3a0] sm:$0xff]  ;;  %272 = vmatpush.msra.mxu1 %v233_v7  ;;  %312 = vmatpush.msra.mxu3 %v234_v9  ;;  %v162_v12 = vld [vmem:[#allocation7 + $0x188] sm:$0xff]  ;;  %v172_v7 = vld [vmem:[#allocation7 + $0x1d8] sm:$0xff] }
  0x1c   :  { %v161_v11 = vld [vmem:[#allocation7 + $0x180] sm:$0xff]  ;;  %v230_v13 = vld [vmem:[#allocation7 + $0x3a8] sm:$0xff]  ;;  %253 = vmatpush.msra.mxu0 %v165_v6  ;;  %293 = vmatpush.msra.mxu2 %v166_v8  ;;  %v239_v6 = vld [vmem:[#allocation7 + $0x3f0] sm:$0xff] }
  0x1d   :  { %v225_v14 = vld [vmem:[#allocation7 + $0x380] sm:$0xff]  ;;  %v226_v15 = vld [vmem:[#allocation7 + $0x388] sm:$0xff]  ;;  %273 = vmatpush.msra.mxu1 %v229_v10  ;;  %313 = vmatpush.msra.mxu3 %v230_v13  ;;  %v240_v8 = vld [vmem:[#allocation7 + $0x3f8] sm:$0xff] }
  0x1e   :  { %v157_v16 = vld [vmem:[#allocation7 + $0x160] sm:$0xff]  ;;  %v158_v17 = vld [vmem:[#allocation7 + $0x168] sm:$0xff]  ;;  %254 = vmatpush.msra.mxu0 %v161_v11  ;;  %294 = vmatpush.msra.mxu2 %v162_v12  ;;  %v167_v9 = vld [vmem:[#allocation7 + $0x1b0] sm:$0xff] }
  0x1f   :  { %v221_v18 = vld [vmem:[#allocation7 + $0x360] sm:$0xff]  ;;  %v222_v19 = vld [vmem:[#allocation7 + $0x368] sm:$0xff]  ;;  %274 = vmatpush.msra.mxu1 %v225_v14  ;;  %314 = vmatpush.msra.mxu3 %v226_v15  ;;  %v235_v11 = vld [vmem:[#allocation7 + $0x3d0] sm:$0xff] }
  0x20   :  { %v153_v20 = vld [vmem:[#allocation7 + $0x140] sm:$0xff]  ;;  %v154_v21 = vld [vmem:[#allocation7 + $0x148] sm:$0xff]  ;;  %255 = vmatpush.msra.mxu0 %v157_v16  ;;  %295 = vmatpush.msra.mxu2 %v158_v17  ;;  %v168_v12 = vld [vmem:[#allocation7 + $0x1b8] sm:$0xff] }
  0x21   :  { %v217_v22 = vld [vmem:[#allocation7 + $0x340] sm:$0xff]  ;;  %v218_v23 = vld [vmem:[#allocation7 + $0x348] sm:$0xff]  ;;  %275 = vmatpush.msra.mxu1 %v221_v18  ;;  %315 = vmatpush.msra.mxu3 %v222_v19  ;;  %v236_v13 = vld [vmem:[#allocation7 + $0x3d8] sm:$0xff] }
  0x22   :  { %v149_v24 = vld [vmem:[#allocation7 + $0x120] sm:$0xff]  ;;  %v150_v25 = vld [vmem:[#allocation7 + $0x128] sm:$0xff]  ;;  %256 = vmatpush.msra.mxu0 %v153_v20  ;;  %296 = vmatpush.msra.mxu2 %v154_v21  ;;  %v163_v14 = vld [vmem:[#allocation7 + $0x190] sm:$0xff] }
  0x23   :  { %v213_v26 = vld [vmem:[#allocation7 + $0x320] sm:$0xff]  ;;  %v214_v27 = vld [vmem:[#allocation7 + $0x328] sm:$0xff]  ;;  %276 = vmatpush.msra.mxu1 %v217_v22  ;;  %316 = vmatpush.msra.mxu3 %v218_v23  ;;  %v231_v15 = vld [vmem:[#allocation7 + $0x3b0] sm:$0xff] }
  0x24   :  { %v145_v28 = vld [vmem:[#allocation7 + $0x100] sm:$0xff]  ;;  %v146_v29 = vld [vmem:[#allocation7 + $0x108] sm:$0xff]  ;;  %257 = vmatpush.msra.mxu0 %v149_v24  ;;  %297 = vmatpush.msra.mxu2 %v150_v25  ;;  %v164_v16 = vld [vmem:[#allocation7 + $0x198] sm:$0xff] }
  0x25   :  { %v209_v30 = vld [vmem:[#allocation7 + $0x300] sm:$0xff]  ;;  %v210_v31 = vld [vmem:[#allocation7 + $0x308] sm:$0xff]  ;;  %277 = vmatpush.msra.mxu1 %v213_v26  ;;  %317 = vmatpush.msra.mxu3 %v214_v27  ;;  %v232_v17 = vld [vmem:[#allocation7 + $0x3b8] sm:$0xff] }
  0x26   :  { %v141_v32 = vld [vmem:[#allocation7 + $0xe0] sm:$0xff]  ;;  %v142_v33 = vld [vmem:[#allocation7 + $0xe8] sm:$0xff]  ;;  %258 = vmatpush.msra.mxu0 %v145_v28  ;;  %298 = vmatpush.msra.mxu2 %v146_v29  ;;  %v227_v18 = vld [vmem:[#allocation7 + $0x390] sm:$0xff] }
  0x27   :  { %v205_v34 = vld [vmem:[#allocation7 + $0x2e0] sm:$0xff]  ;;  %v206_v35 = vld [vmem:[#allocation7 + $0x2e8] sm:$0xff]  ;;  %278 = vmatpush.msra.mxu1 %v209_v30  ;;  %318 = vmatpush.msra.mxu3 %v210_v31  ;;  %v159_v19 = vld [vmem:[#allocation7 + $0x170] sm:$0xff] }
  0x28   :  { %v137_v36 = vld [vmem:[#allocation7 + $0xc0] sm:$0xff]  ;;  %v138_v37 = vld [vmem:[#allocation7 + $0xc8] sm:$0xff]  ;;  %259 = vmatpush.msra.mxu0 %v141_v32  ;;  %299 = vmatpush.msra.mxu2 %v142_v33  ;;  %v160_v20 = vld [vmem:[#allocation7 + $0x178] sm:$0xff] }
  0x29   :  { %v201_v38 = vld [vmem:[#allocation7 + $0x2c0] sm:$0xff]  ;;  %v202_v39 = vld [vmem:[#allocation7 + $0x2c8] sm:$0xff]  ;;  %279 = vmatpush.msra.mxu1 %v205_v34  ;;  %319 = vmatpush.msra.mxu3 %v206_v35  ;;  %v228_v21 = vld [vmem:[#allocation7 + $0x398] sm:$0xff] }
  0x2a   :  { %v133_v40 = vld [vmem:[#allocation7 + $0xa0] sm:$0xff]  ;;  %v134_v41 = vld [vmem:[#allocation7 + $0xa8] sm:$0xff]  ;;  %260 = vmatpush.msra.mxu0 %v137_v36  ;;  %300 = vmatpush.msra.mxu2 %v138_v37  ;;  %v155_v22 = vld [vmem:[#allocation7 + $0x150] sm:$0xff] }
  0x2b   :  { %v197_v42 = vld [vmem:[#allocation7 + $0x2a0] sm:$0xff]  ;;  %v198_v43 = vld [vmem:[#allocation7 + $0x2a8] sm:$0xff]  ;;  %280 = vmatpush.msra.mxu1 %v201_v38  ;;  %320 = vmatpush.msra.mxu3 %v202_v39  ;;  %v223_v23 = vld [vmem:[#allocation7 + $0x370] sm:$0xff] }
  0x2c   :  { %v129_v44 = vld [vmem:[#allocation7 + $0x80] sm:$0xff]  ;;  %v130_v45 = vld [vmem:[#allocation7 + $0x88] sm:$0xff]  ;;  %261 = vmatpush.msra.mxu0 %v133_v40  ;;  %301 = vmatpush.msra.mxu2 %v134_v41  ;;  %v156_v24 = vld [vmem:[#allocation7 + $0x158] sm:$0xff] }
  0x2d   :  { %v193_v46 = vld [vmem:[#allocation7 + $0x280] sm:$0xff]  ;;  %v194_v47 = vld [vmem:[#allocation7 + $0x288] sm:$0xff]  ;;  %281 = vmatpush.msra.mxu1 %v197_v42  ;;  %321 = vmatpush.msra.mxu3 %v198_v43  ;;  %v224_v25 = vld [vmem:[#allocation7 + $0x378] sm:$0xff] }
  0x2e   :  { %v125_v48 = vld [vmem:[#allocation7 + $0x60] sm:$0xff]  ;;  %v126_v49 = vld [vmem:[#allocation7 + $0x68] sm:$0xff]  ;;  %262 = vmatpush.msra.mxu0 %v129_v44  ;;  %302 = vmatpush.msra.mxu2 %v130_v45  ;;  %v151_v26 = vld [vmem:[#allocation7 + $0x130] sm:$0xff] }
  0x2f   :  { %v189_v50 = vld [vmem:[#allocation7 + $0x260] sm:$0xff]  ;;  %v190_v51 = vld [vmem:[#allocation7 + $0x268] sm:$0xff]  ;;  %282 = vmatpush.msra.mxu1 %v193_v46  ;;  %322 = vmatpush.msra.mxu3 %v194_v47  ;;  %v219_v27 = vld [vmem:[#allocation7 + $0x350] sm:$0xff] }
  0x30   :  { %v121_v52 = vld [vmem:[#allocation7 + $0x40] sm:$0xff]  ;;  %v122_v53 = vld [vmem:[#allocation7 + $0x48] sm:$0xff]  ;;  %263 = vmatpush.msra.mxu0 %v125_v48  ;;  %303 = vmatpush.msra.mxu2 %v126_v49  ;;  %v152_v28 = vld [vmem:[#allocation7 + $0x138] sm:$0xff] }
  0x31   :  { %v117_v54 = vld [vmem:[#allocation7 + $0x20] sm:$0xff]  ;;  %v186_v56 = vld [vmem:[#allocation7 + $0x248] sm:$0xff]  ;;  %283 = vmatpush.msra.mxu1 %v189_v50  ;;  %323 = vmatpush.msra.mxu3 %v190_v51  ;;  %v220_v29 = vld [vmem:[#allocation7 + $0x358] sm:$0xff] }
  0x32   :  { %v185_v55 = vld [vmem:[#allocation7 + $0x240] sm:$0xff]  ;;  %v118_v57 = vld [vmem:[#allocation7 + $0x28] sm:$0xff]  ;;  %264 = vmatpush.msra.mxu0 %v121_v52  ;;  %304 = vmatpush.msra.mxu2 %v122_v53  ;;  %v147_v30 = vld [vmem:[#allocation7 + $0x110] sm:$0xff] }
  0x33   :  { %v110_v58 = vld [vmem:[%s1430_s0] sm:$0xff]  ;;  %v182_v61 = vld [vmem:[#allocation7 + $0x228] sm:$0xff]  ;;  %284 = vmatpush.msra.mxu1 %v185_v55  ;;  %324 = vmatpush.msra.mxu3 %v186_v56  ;;  %v215_v31 = vld [vmem:[#allocation7 + $0x330] sm:$0xff]  ;;  %s1176_s0 = smov [#allocation10]  }
  0x34   :  { %v111_v59 = vld [vmem:[%s1433_s3] sm:$0xff]  ;;  %v114_v63 = vld [vmem:[#allocation7 + $0x8] sm:$0xff]  ;;  %265 = vmatpush.msra.mxu0 %v117_v54  ;;  %305 = vmatpush.msra.mxu2 %v118_v57  ;;  %v148_v32 = vld [vmem:[#allocation7 + $0x118] sm:$0xff]  ;;  %s889_s3 = sshll.u32 %s1176_s0, 4  ;;  %s890_s3 = int_to_ptr.vmem [resolvable:$true] %s889_s3 }
  0x35   :  { %v181_v60 = vld [vmem:[#allocation7 + $0x220] sm:$0xff]  ;;  %v1271_v2 = vmul.f32 %v111_v59, %v110_v58  ;;  %325 = vmatpush.msra.mxu3 %v182_v61  ;;  %v178_v4 = vld [vmem:[#allocation7 + $0x208] sm:$0xff]  ;;  %v216_v33 = vld [vmem:[#allocation7 + $0x338] sm:$0xff] }
  0x36   :  { %v113_v62 = vld [vmem:[#allocation7] sm:$0xff]  ;;  %285 = vmatpush.msra.mxu1 %v181_v60  ;;  %306 = vmatpush.msra.mxu2 %v114_v63  ;;  %v143_v34 = vld [vmem:[#allocation7 + $0xf0] sm:$0xff]  ;;  %v144_v36 = vld [vmem:[#allocation7 + $0xf8] sm:$0xff] }
  0x37   :  { %v177_v3 = vld [vmem:[#allocation7 + $0x200] sm:$0xff]  ;;  %266 = vmatpush.msra.mxu0 %v113_v62  ;;  %307 = vmatmul.f32.vlgmr.msra.gmra.mxu2 %v1271_v2  ;;  %v211_v35 = vld [vmem:[#allocation7 + $0x310] sm:$0xff]  ;;  %v212_v37 = vld [vmem:[#allocation7 + $0x318] sm:$0xff] }
  0x38   :  { %371 = vmatpush.msrb.mxu2 %v176_v1  ;;  %286 = vmatpush.msra.mxu1 %v177_v3  ;;  %v1274_v10 = vld [vmem:[#allocation2] sm:$0xff]  ;;  %v139_v38 = vld [vmem:[#allocation7 + $0xd0] sm:$0xff]  ;;  %v140_v40 = vld [vmem:[#allocation7 + $0xd8] sm:$0xff] }
  0x39   :  { %331 = vmatpush.msrb.mxu0 %v175_v0  ;;  %326 = vmatpush.msra.mxu3 %v178_v4  ;;  %v207_v39 = vld [vmem:[#allocation7 + $0x2f0] sm:$0xff]  ;;  %v208_v41 = vld [vmem:[#allocation7 + $0x2f8] sm:$0xff] }
  0x3a   :  { %351 = vmatpush.msrb.mxu1 %v239_v6  ;;  %372 = vmatpush.msrb.mxu2 %v172_v7  ;;  %v135_v42 = vld [vmem:[#allocation7 + $0xb0] sm:$0xff]  ;;  %v136_v44 = vld [vmem:[#allocation7 + $0xb8] sm:$0xff]  ;;  %v539_v6 = vld [vmem:[#allocation8 + $0x1e8] sm:$0xff] }
  0x3b   :  { %332 = vmatpush.msrb.mxu0 %v171_v5  ;;  %391 = vmatpush.msrb.mxu3 %v240_v8  ;;  %v203_v43 = vld [vmem:[#allocation7 + $0x2d0] sm:$0xff]  ;;  %v204_v45 = vld [vmem:[#allocation7 + $0x2d8] sm:$0xff]  ;;  %v538_v5 = vld [vmem:[#allocation8 + $0x1e0] sm:$0xff] }
  0x3c   :  { %327 = vmatmul.f32.vlgmr.msra.gmra.mxu3 %v1274_v10  ;;  %352 = vmatpush.msrb.mxu1 %v235_v11  ;;  %v131_v46 = vld [vmem:[#allocation7 + $0x90] sm:$0xff]  ;;  %v132_v48 = vld [vmem:[#allocation7 + $0x98] sm:$0xff]  ;;  %v534_v7 = vld [vmem:[#allocation8 + $0x1c0] sm:$0xff] }
  0x3d   :  { %333 = vmatpush.msrb.mxu0 %v167_v9  ;;  %373 = vmatpush.msrb.mxu2 %v168_v12  ;;  %v199_v47 = vld [vmem:[#allocation7 + $0x2b0] sm:$0xff]  ;;  %v200_v49 = vld [vmem:[#allocation7 + $0x2b8] sm:$0xff]  ;;  %v602_v8 = vld [vmem:[#allocation8 + $0x3e0] sm:$0xff] }
  0x3e   :  { %392 = vmatpush.msrb.mxu3 %v236_v13  ;;  %353 = vmatpush.msrb.mxu1 %v231_v15  ;;  %v127_v50 = vld [vmem:[#allocation7 + $0x70] sm:$0xff]  ;;  %v128_v52 = vld [vmem:[#allocation7 + $0x78] sm:$0xff]  ;;  %v535_v9 = vld [vmem:[#allocation8 + $0x1c8] sm:$0xff] }
  0x3f   :  { %334 = vmatpush.msrb.mxu0 %v163_v14  ;;  %374 = vmatpush.msrb.mxu2 %v164_v16  ;;  %v195_v51 = vld [vmem:[#allocation7 + $0x290] sm:$0xff]  ;;  %v196_v53 = vld [vmem:[#allocation7 + $0x298] sm:$0xff]  ;;  %v603_v11 = vld [vmem:[#allocation8 + $0x3e8] sm:$0xff] }
  0x40   :  { %393 = vmatpush.msrb.mxu3 %v232_v17  ;;  %267 = vmatmul.f32.vlgmr.msra.gmra.mxu0 %v1271_v2  ;;  %v123_v54 = vld [vmem:[#allocation7 + $0x50] sm:$0xff]  ;;  %v124_v56 = vld [vmem:[#allocation7 + $0x58] sm:$0xff]  ;;  %v530_v12 = vld [vmem:[#allocation8 + $0x1a0] sm:$0xff] }
  0x41   :  { %354 = vmatpush.msrb.mxu1 %v227_v18  ;;  %335 = vmatpush.msrb.mxu0 %v159_v19  ;;  %v191_v55 = vld [vmem:[#allocation7 + $0x270] sm:$0xff]  ;;  %v192_v57 = vld [vmem:[#allocation7 + $0x278] sm:$0xff]  ;;  %v531_v13 = vld [vmem:[#allocation8 + $0x1a8] sm:$0xff] }
  0x42   :  { %375 = vmatpush.msrb.mxu2 %v160_v20  ;;  %394 = vmatpush.msrb.mxu3 %v228_v21  ;;  %v119_v58 = vld [vmem:[#allocation7 + $0x30] sm:$0xff]  ;;  %v120_v60 = vld [vmem:[#allocation7 + $0x38] sm:$0xff]  ;;  %v599_v14 = vld [vmem:[#allocation8 + $0x3c8] sm:$0xff] }
  0x43   :  { %287 = vmatmul.f32.vlgmr.msra.gmra.mxu1 %v1274_v10  ;;  %336 = vmatpush.msrb.mxu0 %v155_v22  ;;  %v187_v59 = vld [vmem:[#allocation7 + $0x250] sm:$0xff]  ;;  %v188_v61 = vld [vmem:[#allocation7 + $0x258] sm:$0xff]  ;;  %v594_v15 = vld [vmem:[#allocation8 + $0x3a0] sm:$0xff] }
  0x44   :  { %355 = vmatpush.msrb.mxu1 %v223_v23  ;;  %376 = vmatpush.msrb.mxu2 %v156_v24  ;;  %v115_v62 = vld [vmem:[#allocation7 + $0x10] sm:$0xff]  ;;  %v116_v0 = vld [vmem:[#allocation7 + $0x18] sm:$0xff]  ;;  %v527_v16 = vld [vmem:[#allocation8 + $0x188] sm:$0xff] }
  0x45   :  { %395 = vmatpush.msrb.mxu3 %v224_v25  ;;  %337 = vmatpush.msrb.mxu0 %v151_v26  ;;  %v183_v63 = vld [vmem:[#allocation7 + $0x230] sm:$0xff]  ;;  %v184_v1 = vld [vmem:[#allocation7 + $0x238] sm:$0xff]  ;;  %v595_v17 = vld [vmem:[#allocation8 + $0x3a8] sm:$0xff] }
  0x46   :  { %356 = vmatpush.msrb.mxu1 %v219_v27  ;;  %377 = vmatpush.msrb.mxu2 %v152_v28  ;;  %v179_v3 = vld [vmem:[#allocation7 + $0x210] sm:$0xff]  ;;  %v180_v4 = vld [vmem:[#allocation7 + $0x218] sm:$0xff]  ;;  %v522_v18 = vld [vmem:[#allocation8 + $0x160] sm:$0xff] }
  0x47   :  { %396 = vmatpush.msrb.mxu3 %v220_v29  ;;  %338 = vmatpush.msrb.mxu0 %v147_v30  ;;  %v590_v19 = vld [vmem:[#allocation8 + $0x380] sm:$0xff]  ;;  %v523_v20 = vld [vmem:[#allocation8 + $0x168] sm:$0xff] }
  0x48   :  { %357 = vmatpush.msrb.mxu1 %v215_v31  ;;  %378 = vmatpush.msrb.mxu2 %v148_v32  ;;  %v591_v21 = vld [vmem:[#allocation8 + $0x388] sm:$0xff]  ;;  %v518_v22 = vld [vmem:[#allocation8 + $0x140] sm:$0xff] }
  0x49   :  { %397 = vmatpush.msrb.mxu3 %v216_v33  ;;  %339 = vmatpush.msrb.mxu0 %v143_v34  ;;  %v586_v23 = vld [vmem:[#allocation8 + $0x360] sm:$0xff]  ;;  %v519_v24 = vld [vmem:[#allocation8 + $0x148] sm:$0xff] }
  0x4a   :  { %358 = vmatpush.msrb.mxu1 %v211_v35  ;;  %379 = vmatpush.msrb.mxu2 %v144_v36  ;;  %v587_v25 = vld [vmem:[#allocation8 + $0x368] sm:$0xff]  ;;  %v514_v26 = vld [vmem:[#allocation8 + $0x120] sm:$0xff] }
  0x4b   :  { %398 = vmatpush.msrb.mxu3 %v212_v37  ;;  %340 = vmatpush.msrb.mxu0 %v139_v38  ;;  %v582_v27 = vld [vmem:[#allocation8 + $0x340] sm:$0xff]  ;;  %v515_v28 = vld [vmem:[#allocation8 + $0x128] sm:$0xff] }
  0x4c   :  { %359 = vmatpush.msrb.mxu1 %v207_v39  ;;  %380 = vmatpush.msrb.mxu2 %v140_v40  ;;  %v583_v29 = vld [vmem:[#allocation8 + $0x348] sm:$0xff]  ;;  %v510_v30 = vld [vmem:[#allocation8 + $0x100] sm:$0xff] }
  0x4d   :  { %399 = vmatpush.msrb.mxu3 %v208_v41  ;;  %341 = vmatpush.msrb.mxu0 %v135_v42  ;;  %v578_v31 = vld [vmem:[#allocation8 + $0x320] sm:$0xff]  ;;  %v511_v32 = vld [vmem:[#allocation8 + $0x108] sm:$0xff] }
  0x4e   :  { %360 = vmatpush.msrb.mxu1 %v203_v43  ;;  %381 = vmatpush.msrb.mxu2 %v136_v44  ;;  %v579_v33 = vld [vmem:[#allocation8 + $0x328] sm:$0xff]  ;;  %v506_v34 = vld [vmem:[#allocation8 + $0xe0] sm:$0xff] }
  0x4f   :  { %400 = vmatpush.msrb.mxu3 %v204_v45  ;;  %342 = vmatpush.msrb.mxu0 %v131_v46  ;;  %v574_v35 = vld [vmem:[#allocation8 + $0x300] sm:$0xff]  ;;  %v507_v36 = vld [vmem:[#allocation8 + $0xe8] sm:$0xff] }
  0x50   :  { %361 = vmatpush.msrb.mxu1 %v199_v47  ;;  %382 = vmatpush.msrb.mxu2 %v132_v48  ;;  %v1286_v37 = vld [vmem:[%s1436_s6] sm:$0xf]  ;;  %v575_v38 = vld [vmem:[#allocation8 + $0x308] sm:$0xff] }
  0x51   :  { %401 = vmatpush.msrb.mxu3 %v200_v49  ;;  %343 = vmatpush.msrb.mxu0 %v127_v50  ;;  %v502_v39 = vld [vmem:[#allocation8 + $0xc0] sm:$0xff]  ;;  %v503_v41 = vld [vmem:[#allocation8 + $0xc8] sm:$0xff]  ;;  %v244_v43 = vperm.slane %v1286_v37, 1  ;;  %v243_v48 = vperm.slane %v1286_v37, 0 }
  0x52   :  { %362 = vmatpush.msrb.mxu1 %v195_v51  ;;  %383 = vmatpush.msrb.mxu2 %v128_v52  ;;  %v570_v40 = vld [vmem:[#allocation8 + $0x2e0] sm:$0xff]  ;;  %v571_v42 = vld [vmem:[#allocation8 + $0x2e8] sm:$0xff] }
  0x53   :  { %402 = vmatpush.msrb.mxu3 %v196_v53  ;;  %344 = vmatpush.msrb.mxu0 %v123_v54  ;;  %v498_v44 = vld [vmem:[#allocation8 + $0xa0] sm:$0xff]  ;;  %v499_v46 = vld [vmem:[#allocation8 + $0xa8] sm:$0xff] }
  0x54   :  { %363 = vmatpush.msrb.mxu1 %v191_v55  ;;  %384 = vmatpush.msrb.mxu2 %v124_v56  ;;  %v566_v45 = vld [vmem:[#allocation8 + $0x2c0] sm:$0xff]  ;;  %v567_v47 = vld [vmem:[#allocation8 + $0x2c8] sm:$0xff] }
  0x55   :  { %403 = vmatpush.msrb.mxu3 %v192_v57  ;;  %345 = vmatpush.msrb.mxu0 %v119_v58  ;;  %v494_v49 = vld [vmem:[#allocation8 + $0x80] sm:$0xff]  ;;  %v495_v51 = vld [vmem:[#allocation8 + $0x88] sm:$0xff] }
  0x56   :  { %364 = vmatpush.msrb.mxu1 %v187_v59  ;;  %385 = vmatpush.msrb.mxu2 %v120_v60  ;;  %v562_v50 = vld [vmem:[#allocation8 + $0x2a0] sm:$0xff]  ;;  %v563_v53 = vld [vmem:[#allocation8 + $0x2a8] sm:$0xff] }
  0x57   :  { %404 = vmatpush.msrb.mxu3 %v188_v61  ;;  %346 = vmatpush.msrb.mxu0 %v115_v62  ;;  %v490_v55 = vld [vmem:[#allocation8 + $0x60] sm:$0xff]  ;;  %v491_v57 = vld [vmem:[#allocation8 + $0x68] sm:$0xff] }
  0x58   :  { %365 = vmatpush.msrb.mxu1 %v183_v63  ;;  %386 = vmatpush.msrb.mxu2 %v116_v0  ;;  %v558_v56 = vld [vmem:[#allocation8 + $0x280] sm:$0xff]  ;;  %v559_v59 = vld [vmem:[#allocation8 + $0x288] sm:$0xff] }
  0x59   :  { %405 = vmatpush.msrb.mxu3 %v184_v1  ;;  %347 = vmatmul.f32.vlgmr.msrb.gmra.mxu0 %v1271_v2  ;;  %v486_v61 = vld [vmem:[#allocation8 + $0x40] sm:$0xff]  ;;  %v487_v1 = vld [vmem:[#allocation8 + $0x48] sm:$0xff] }
  0x5a   :  { %387 = vmatmul.f32.vlgmr.msrb.gmra.mxu2 %v1271_v2  ;;  %366 = vmatpush.msrb.mxu1 %v179_v3  ;;  %v598_v2 = vld [vmem:[#allocation8 + $0x3c0] sm:$0xff]  ;;  %v555_v3 = vld [vmem:[#allocation8 + $0x268] sm:$0xff] }
  0x5b   :  { %406 = vmatpush.msrb.mxu3 %v180_v4  ;;  %367 = vmatmul.f32.vlgmr.msrb.gmra.mxu1 %v1274_v10  ;;  %v554_v62 = vld [vmem:[#allocation8 + $0x260] sm:$0xff] }
  0x5c   :  { %407 = vmatmul.f32.vlgmr.msrb.gmra.mxu3 %v1274_v10  ;;  %616 = vmatpush.msra.mxu0 %v538_v5  ;;  %v526_v10 = vld [vmem:[#allocation8 + $0x180] sm:$0xff] }
  0x5d   :  { %656 = vmatpush.msra.mxu2 %v539_v6  ;;  %636 = vmatpush.msra.mxu1 %v602_v8  ;;  %v482_v6 = vld [vmem:[#allocation8 + $0x20] sm:$0xff]  ;;  %v483_v8 = vld [vmem:[#allocation8 + $0x28] sm:$0xff] }
  0x5e   :  { %617 = vmatpush.msra.mxu0 %v534_v7  ;;  %676 = vmatpush.msra.mxu3 %v603_v11  ;;  %v550_v7 = vld [vmem:[#allocation8 + $0x240] sm:$0xff] }
  0x5f   :  { %657 = vmatpush.msra.mxu2 %v535_v9  ;;  %637 = vmatpush.msra.mxu1 %v598_v2  ;;  %v551_v9 = vld [vmem:[#allocation8 + $0x248] sm:$0xff]  ;;  %v478_v2 = vld [vmem:[#allocation8] sm:$0xff] }
  0x60   :  { %618 = vmatpush.msra.mxu0 %v530_v12  ;;  %677 = vmatpush.msra.mxu3 %v599_v14  ;;  %v479_v14 = vld [vmem:[#allocation8 + $0x8] sm:$0xff] }
  0x61   :  { %658 = vmatpush.msra.mxu2 %v531_v13  ;;  %638 = vmatpush.msra.mxu1 %v594_v15  ;;  %v546_v13 = vld [vmem:[#allocation8 + $0x220] sm:$0xff]  ;;  %v540_v15 = vld [vmem:[#allocation8 + $0x1f0] sm:$0xff] }
  0x62   :  { %619 = vmatpush.msra.mxu0 %v526_v10  ;;  %678 = vmatpush.msra.mxu3 %v595_v17  ;;  %v547_v10 = vld [vmem:[#allocation8 + $0x228] sm:$0xff]  ;;  %v542_v17 = vld [vmem:[#allocation8 + $0x200] sm:$0xff] }
  0x63   :  { %659 = vmatpush.msra.mxu2 %v527_v16  ;;  %639 = vmatpush.msra.mxu1 %v590_v19  ;;  %v541_v16 = vld [vmem:[#allocation8 + $0x1f8] sm:$0xff]  ;;  %v536_v19 = vld [vmem:[#allocation8 + $0x1d0] sm:$0xff] }
  0x64   :  { %620 = vmatpush.msra.mxu0 %v522_v18  ;;  %679 = vmatpush.msra.mxu3 %v591_v21  ;;  %v543_v18 = vld [vmem:[#allocation8 + $0x208] sm:$0xff]  ;;  %v537_v21 = vld [vmem:[#allocation8 + $0x1d8] sm:$0xff] }
  0x65   :  { %660 = vmatpush.msra.mxu2 %v523_v20  ;;  %640 = vmatpush.msra.mxu1 %v586_v23  ;;  %v604_v20 = vld [vmem:[#allocation8 + $0x3f0] sm:$0xff] }
  0x66   :  { %621 = vmatpush.msra.mxu0 %v518_v22  ;;  %680 = vmatpush.msra.mxu3 %v587_v25  ;;  %v605_v22 = vld [vmem:[#allocation8 + $0x3f8] sm:$0xff]  ;;  %v532_v23 = vld [vmem:[#allocation8 + $0x1b0] sm:$0xff] }
  0x67   :  { %661 = vmatpush.msra.mxu2 %v519_v24  ;;  %641 = vmatpush.msra.mxu1 %v582_v27  ;;  %v600_v24 = vld [vmem:[#allocation8 + $0x3d0] sm:$0xff]  ;;  %v533_v25 = vld [vmem:[#allocation8 + $0x1b8] sm:$0xff] }
  0x68   :  { %622 = vmatpush.msra.mxu0 %v514_v26  ;;  %681 = vmatpush.msra.mxu3 %v583_v29  ;;  %v601_v26 = vld [vmem:[#allocation8 + $0x3d8] sm:$0xff]  ;;  %v528_v27 = vld [vmem:[#allocation8 + $0x190] sm:$0xff] }
  0x69   :  { %662 = vmatpush.msra.mxu2 %v515_v28  ;;  %642 = vmatpush.msra.mxu1 %v578_v31  ;;  %v596_v28 = vld [vmem:[#allocation8 + $0x3b0] sm:$0xff]  ;;  %v529_v29 = vld [vmem:[#allocation8 + $0x198] sm:$0xff] }
  0x6a   :  { %623 = vmatpush.msra.mxu0 %v510_v30  ;;  %682 = vmatpush.msra.mxu3 %v579_v33  ;;  %v597_v31 = vld [vmem:[#allocation8 + $0x3b8] sm:$0xff] }
  0x6b   :  { %663 = vmatpush.msra.mxu2 %v511_v32  ;;  %643 = vmatpush.msra.mxu1 %v574_v35  ;;  %v592_v35 = vld [vmem:[#allocation8 + $0x390] sm:$0xff] }
  0x6c   :  { %624 = vmatpush.msra.mxu0 %v506_v34  ;;  %683 = vmatpush.msra.mxu3 %v575_v38  ;;  %v524_v34 = vld [vmem:[#allocation8 + $0x170] sm:$0xff] }
  0x6d   :  { %664 = vmatpush.msra.mxu2 %v507_v36  ;;  %644 = vmatpush.msra.mxu1 %v570_v40  ;;  %v525_v36 = vld [vmem:[#allocation8 + $0x178] sm:$0xff]  ;;  %v520_v40 = vld [vmem:[#allocation8 + $0x150] sm:$0xff] }
  0x6e   :  { %625 = vmatpush.msra.mxu0 %v502_v39  ;;  %684 = vmatpush.msra.mxu3 %v571_v42  ;;  %v593_v39 = vld [vmem:[#allocation8 + $0x398] sm:$0xff] }
  0x6f   :  { %665 = vmatpush.msra.mxu2 %v503_v41  ;;  %645 = vmatpush.msra.mxu1 %v566_v45  ;;  %v588_v41 = vld [vmem:[#allocation8 + $0x370] sm:$0xff]  ;;  %v521_v42 = vld [vmem:[#allocation8 + $0x158] sm:$0xff] }
  0x70   :  { %626 = vmatpush.msra.mxu0 %v498_v44  ;;  %685 = vmatpush.msra.mxu3 %v567_v47  ;;  %v516_v44 = vld [vmem:[#allocation8 + $0x130] sm:$0xff]  ;;  %v585_v47 = vld [vmem:[#allocation8 + $0x358] sm:$0xff] }
  0x71   :  { %666 = vmatpush.msra.mxu2 %v499_v46  ;;  %646 = vmatpush.msra.mxu1 %v562_v50  ;;  %v584_v45 = vld [vmem:[#allocation8 + $0x350] sm:$0xff]  ;;  %v517_v46 = vld [vmem:[#allocation8 + $0x138] sm:$0xff] }
  0x72   :  { %627 = vmatpush.msra.mxu0 %v494_v49  ;;  %686 = vmatpush.msra.mxu3 %v563_v53  ;;  %v580_v49 = vld [vmem:[#allocation8 + $0x330] sm:$0xff]  ;;  %v513_v50 = vld [vmem:[#allocation8 + $0x118] sm:$0xff] }
  0x73   :  { %667 = vmatpush.msra.mxu2 %v495_v51  ;;  %647 = vmatpush.msra.mxu1 %v558_v56  ;;  %v581_v51 = vld [vmem:[#allocation8 + $0x338] sm:$0xff]  ;;  %v576_v53 = vld [vmem:[#allocation8 + $0x310] sm:$0xff] }
  0x74   :  { %628 = vmatpush.msra.mxu0 %v490_v55  ;;  %687 = vmatpush.msra.mxu3 %v559_v59  ;;  %v245_v55 = vperm.slane %v1286_v37, 2  ;;  %v509_v56 = vld [vmem:[#allocation8 + $0xf8] sm:$0xff] }
  0x75   :  { %668 = vmatpush.msra.mxu2 %v491_v57  ;;  %648 = vmatpush.msra.mxu1 %v554_v62  ;;  %v577_v57 = vld [vmem:[#allocation8 + $0x318] sm:$0xff] }
  0x76   :  { %629 = vmatpush.msra.mxu0 %v486_v61  ;;  %688 = vmatpush.msra.mxu3 %v555_v3  ;;  %v572_v61 = vld [vmem:[#allocation8 + $0x2f0] sm:$0xff] }
  0x77   :  { %669 = vmatpush.msra.mxu2 %v487_v1  ;;  %649 = vmatpush.msra.mxu1 %v550_v7  ;;  %v500_v3 = vld [vmem:[#allocation8 + $0xb0] sm:$0xff]  ;;  %v501_v7 = vld [vmem:[#allocation8 + $0xb8] sm:$0xff] }
  0x78   :  { %630 = vmatpush.msra.mxu0 %v482_v6  ;;  %689 = vmatpush.msra.mxu3 %v551_v9 }
  0x79   :  { %670 = vmatpush.msra.mxu2 %v483_v8  ;;  %650 = vmatpush.msra.mxu1 %v546_v13  ;;  %v569_v8 = vld [vmem:[#allocation8 + $0x2d8] sm:$0xff] }
  0x7a   :  { %631 = vmatpush.msra.mxu0 %v478_v2  ;;  %690 = vmatpush.msra.mxu3 %v547_v10  ;;  %v564_v2 = vld [vmem:[#allocation8 + $0x2b0] sm:$0xff]  ;;  %v497_v10 = vld [vmem:[#allocation8 + $0x98] sm:$0xff] }
  0x7b   :  { %671 = vmatpush.msra.mxu2 %v479_v14  ;;  %651 = vmatpush.msra.mxu1 %v542_v17  ;;  %v246_v14 = vperm.slane %v1286_v37, 3 }
  0x7c   :  { %696 = vmatpush.msrb.mxu0 %v540_v15  ;;  %691 = vmatpush.msra.mxu3 %v543_v18  ;;  %v565_v15 = vld [vmem:[#allocation8 + $0x2b8] sm:$0xff]  ;;  %v492_v18 = vld [vmem:[#allocation8 + $0x70] sm:$0xff] }
  0x7d   :  { %736 = vmatpush.msrb.mxu2 %v541_v16  ;;  %716 = vmatpush.msrb.mxu1 %v604_v20  ;;  %v493_v20 = vld [vmem:[#allocation8 + $0x78] sm:$0xff] }
  0x7e   :  { %697 = vmatpush.msrb.mxu0 %v536_v19  ;;  %756 = vmatpush.msrb.mxu3 %v605_v22  ;;  %v560_v19 = vld [vmem:[#allocation8 + $0x290] sm:$0xff]  ;;  %v561_v22 = vld [vmem:[#allocation8 + $0x298] sm:$0xff] }
  0x7f   :  { %737 = vmatpush.msrb.mxu2 %v537_v21  ;;  %717 = vmatpush.msrb.mxu1 %v600_v24 }
  0x80   :  { %698 = vmatpush.msrb.mxu0 %v532_v23  ;;  %757 = vmatpush.msrb.mxu3 %v601_v26  ;;  %v1310_v23 = vld [vmem:[#allocation2 + $0x8] sm:$0xff]  ;;  %v488_v26 = vld [vmem:[#allocation8 + $0x50] sm:$0xff] }
  0x81   :  { %738 = vmatpush.msrb.mxu2 %v533_v25  ;;  %718 = vmatpush.msrb.mxu1 %v596_v28 }
  0x82   :  { %699 = vmatpush.msrb.mxu0 %v528_v27  ;;  %758 = vmatpush.msrb.mxu3 %v597_v31  ;;  %v556_v27 = vld [vmem:[#allocation8 + $0x270] sm:$0xff]  ;;  %v489_v31 = vld [vmem:[#allocation8 + $0x58] sm:$0xff] }
  0x83   :  { %739 = vmatpush.msrb.mxu2 %v529_v29  ;;  %719 = vmatpush.msrb.mxu1 %v592_v35 }
  0x84   :  { %700 = vmatpush.msrb.mxu0 %v524_v34  ;;  %759 = vmatpush.msrb.mxu3 %v593_v39  ;;  %v484_v39 = vld [vmem:[#allocation8 + $0x30] sm:$0xff] }
  0x85   :  { %740 = vmatpush.msrb.mxu2 %v525_v36  ;;  %720 = vmatpush.msrb.mxu1 %v588_v41 }
  0x86   :  { %701 = vmatpush.msrb.mxu0 %v520_v40  ;;  %652 = vmatmul.f32.vlgmr.msra.gmra.mxu1 %v1310_v23  ;;  %v552_v40 = vld [vmem:[#allocation8 + $0x250] sm:$0xff] }
  0x87   :  { %741 = vmatpush.msrb.mxu2 %v521_v42  ;;  %721 = vmatpush.msrb.mxu1 %v584_v45  ;;  %v846_v45 = vld [vmem:[%s1439_s9 + $0x18] sm:$0xff] }
  0x88   :  { %702 = vmatpush.msrb.mxu0 %v516_v44  ;;  %692 = vmatmul.f32.vlgmr.msra.gmra.mxu3 %v1310_v23 }
  0x89   :  { %742 = vmatpush.msrb.mxu2 %v517_v46  ;;  %722 = vmatpush.msrb.mxu1 %v580_v49  ;;  %v480_v46 = vld [vmem:[#allocation8 + $0x10] sm:$0xff] }
  0x8b   :  { %743 = vmatpush.msrb.mxu2 %v513_v50  ;;  %723 = vmatpush.msrb.mxu1 %v576_v53  ;;  %v549_v50 = vld [vmem:[#allocation8 + $0x238] sm:$0xff]  ;;  %v544_v53 = vld [vmem:[#allocation8 + $0x210] sm:$0xff] }
  0x8d   :  { %744 = vmatpush.msrb.mxu2 %v509_v56  ;;  %724 = vmatpush.msrb.mxu1 %v572_v61 }
  0xba   :  { %v308_v52 = vpop.f32.mrf.mxu2 }
  0xbb   :  { %v309_v54 = vadd.f32 %v308_v52, %v244_v43  ;;  %v589_v43 = vld [vmem:[#allocation8 + $0x378] sm:$0xff]  ;;  %v508_v52 = vld [vmem:[#allocation8 + $0xf0] sm:$0xff] }
  0xbc   :  { %760 = vmatpush.msrb.mxu3 %v589_v43  ;;  %v553_v43 = vld [vmem:[#allocation8 + $0x258] sm:$0xff] }
  0xbd   :  { %v268_v58 = vpop.f32.mrf.mxu0 }
  0xbe   :  { %v269_v60 = vadd.f32 %v268_v58, %v243_v48  ;;  %v512_v48 = vld [vmem:[#allocation8 + $0x110] sm:$0xff]  ;;  %761 = vmatpush.msrb.mxu3 %v585_v47 }
  0xbf   :  { %v328_v0 = vpop.f32.mrf.mxu3  ;;  %703 = vmatpush.msrb.mxu0 %v512_v48  ;;  %v548_v47 = vld [vmem:[#allocation8 + $0x230] sm:$0xff] }
  0xc0   :  { %v288_v63 = vpop.f32.mrf.mxu1  ;;  %v329_v5 = vadd.f32 %v328_v0, %v309_v54  ;;  %762 = vmatpush.msrb.mxu3 %v581_v51  ;;  %v573_v0 = vld [vmem:[#allocation8 + $0x2f8] sm:$0xff] }
  0xc1   :  { %v289_v4 = vadd.f32 %v288_v63, %v269_v60  ;;  %v504_v60 = vld [vmem:[#allocation8 + $0xd0] sm:$0xff]  ;;  %704 = vmatpush.msrb.mxu0 %v508_v52  ;;  %v505_v63 = vld [vmem:[#allocation8 + $0xd8] sm:$0xff] }
  0xc2   :  { %v939_v12 = vmul.f32 -1.442695, %v329_v5  ;;  %763 = vmatpush.msrb.mxu3 %v577_v57  ;;  %745 = vmatpush.msrb.mxu2 %v505_v63  ;;  %v545_v57 = vld [vmem:[#allocation8 + $0x218] sm:$0xff] }
  0xc3   :  { %v938_v11 = vmul.f32 -1.442695, %v289_v4  ;;  %v568_v4 = vld [vmem:[#allocation8 + $0x2d0] sm:$0xff]  ;;  %705 = vmatpush.msrb.mxu0 %v504_v60 }
  0xc4   :  { %764 = vmatpush.msrb.mxu3 %v573_v0  ;;  %725 = vmatpush.msrb.mxu1 %v568_v4 }
  0xc5   :  { %956 = vpow2.f32 %v938_v11  ;;  %706 = vmatpush.msrb.mxu0 %v500_v3  ;;  %746 = vmatpush.msrb.mxu2 %v501_v7 }
  0xc6   :  { %958 = vpow2.f32 %v939_v12  ;;  %v496_v12 = vld [vmem:[#allocation8 + $0x90] sm:$0xff]  ;;  %765 = vmatpush.msrb.mxu3 %v569_v8  ;;  %726 = vmatpush.msrb.mxu1 %v564_v2  ;;  %v476_v2 = vld [vmem:[%s1434_s4] sm:$0xff] }
  0xc7   :  { %707 = vmatpush.msrb.mxu0 %v496_v12  ;;  %747 = vmatpush.msrb.mxu2 %v497_v10  ;;  %v858_v10 = vld [vmem:[%s1439_s9 + $0x78] sm:$0xff] }
  0xc8   :  { %766 = vmatpush.msrb.mxu3 %v565_v15  ;;  %727 = vmatpush.msrb.mxu1 %v560_v19  ;;  %v857_v15 = vld [vmem:[%s1439_s9 + $0x70] sm:$0xff] }
  0xc9   :  { %708 = vmatpush.msrb.mxu0 %v492_v18  ;;  %748 = vmatpush.msrb.mxu2 %v493_v20  ;;  %v855_v18 = vld [vmem:[%s1439_s9 + $0x60] sm:$0xff]  ;;  %v854_v20 = vld [vmem:[%s1439_s9 + $0x58] sm:$0xff] }
  0xca   :  { %767 = vmatpush.msrb.mxu3 %v561_v22  ;;  %728 = vmatpush.msrb.mxu1 %v556_v27  ;;  %v851_v27 = vld [vmem:[%s1439_s9 + $0x40] sm:$0xff] }
  0xcb   :  { %v957_v30 = vpop.eup %956  ;;  %709 = vmatpush.msrb.mxu0 %v488_v26  ;;  %749 = vmatpush.msrb.mxu2 %v489_v31 }
  0xcc   :  { %v959_v32 = vpop.eup %958  ;;  %v1290_v33 = vadd.f32 1.0, %v957_v30  ;;  %729 = vmatpush.msrb.mxu1 %v552_v40 }
  0xcd   :  { %v1292_v38 = vadd.f32 1.0, %v959_v32  ;;  %v557_v32 = vld [vmem:[#allocation8 + $0x278] sm:$0xff]  ;;  %710 = vmatpush.msrb.mxu0 %v484_v39 }
  0xce   :  { %960 = vrcp.f32 %v1290_v33  ;;  %vm428_vm2 = vweird.f32 %v1290_v33  ;;  %v434_v36 = vand.u32 2147483648, %v1290_v33  ;;  %v432_v42 = vand.u32 2147483647, %v1290_v33  ;;  %768 = vmatpush.msrb.mxu3 %v557_v32  ;;  %730 = vmatpush.msrb.mxu1 %v548_v47 }
  0xcf   :  { %962 = vrcp.f32 %v1292_v38  ;;  %vm443_vm0 = vweird.f32 %v1292_v38  ;;  %v449_v24 = vand.u32 2147483648, %v1292_v38  ;;  %v447_v30 = vand.u32 2147483647, %v1292_v38  ;;  %711 = vmatpush.msrb.mxu0 %v480_v46 }
  0xd0   :  { %v435_v52 = vor.u32 1.1754944e-38, %v434_v36  ;;  %769 = vmatpush.msrb.mxu3 %v553_v43  ;;  %vm433_vm7 = vcmp.eq.f32.partialorder %v432_v42, 8.507059e+37  ;;  %731 = vmatpush.msrb.mxu1 %v544_v53  ;;  %v848_v42 = vld [vmem:[%s1439_s9 + $0x28] sm:$0xff] }
  0xd1   :  { %v450_v44 = vor.u32 1.1754944e-38, %v449_v24  ;;  %vm1341_vm6 = vcmp.eq.f32.partialorder %v447_v30, 8.507059e+37  ;;  %732 = vmatmul.f32.vlgmr.msrb.gmra.mxu1 %v1310_v23  ;;  %v852_v24 = vld [vmem:[%s1439_s9 + $0x48] sm:$0xff]  ;;  %v850_v30 = vld [vmem:[%s1439_s9 + $0x38] sm:$0xff] }
  0xd2   :  { %770 = vmatpush.msrb.mxu3 %v549_v50  ;;  %v843_v50 = vld [vmem:[%s1439_s9] sm:$0xff] }
  0xd4   :  { %v1296_v54 = vpop.eup %960  ;;  %771 = vmatpush.msrb.mxu3 %v545_v57 }
  0xd5   :  { %v1299_v58 = vpop.eup %962  ;;  %v424_v59 = vmul.f32 %v1296_v54, %v1290_v33  ;;  %vm429_vm3 = vweird.f32 %v1296_v54  ;;  %v481_v33 = vld [vmem:[#allocation8 + $0x18] sm:$0xff]  ;;  %772 = vmatmul.f32.vlgmr.msrb.gmra.mxu3 %v1310_v23 }
  0xd6   :  { %v439_v62 = vmul.f32 %v1299_v58, %v1292_v38  ;;  %v348_v1 = vpop.f32.mrf.mxu0  ;;  %vm444_vm1 = vweird.f32 %v1299_v58  ;;  %v485_v38 = vld [vmem:[#allocation8 + $0x38] sm:$0xff]  ;;  %vm1334_vm5 = vmor %vm428_vm2, %vm429_vm3 }
  0xd7   :  { %v349_v6 = vadd.f32 %v348_v1, %v245_v55  ;;  %v425_v9 = vsub.f32 1.0, %v424_v59  ;;  %vm1321_vm4 = vmor %vm443_vm0, %vm444_vm1  ;;  %750 = vmatpush.msrb.mxu2 %v485_v38 }
  0xd8   :  { %v440_v5 = vsub.f32 1.0, %v439_v62  ;;  %v368_v11 = vpop.f32.mrf.mxu1 }
  0xd9   :  { %v369_v13 = vadd.f32 %v368_v11, %v349_v6  ;;  %v426_v37 = vmul.f32 %v1296_v54, %v425_v9  ;;  %751 = vmatpush.msrb.mxu2 %v481_v33  ;;  %v844_v33 = vld [vmem:[%s1439_s9 + $0x8] sm:$0xff] }
  0xda   :  { %v441_v16 = vmul.f32 %v1299_v58, %v440_v5 }
  0xdb   :  { %v940_v17 = vmul.f32 -1.442695, %v369_v13  ;;  %v427_v41 = vadd.f32 %v1296_v54, %v426_v37  ;;  %v853_v37 = vld [vmem:[%s1439_s9 + $0x50] sm:$0xff] }
  0xdc   :  { %v442_v29 = vadd.f32 %v1299_v58, %v441_v16  ;;  %v856_v16 = vld [vmem:[%s1439_s9 + $0x68] sm:$0xff] }
  0xdd   :  { %v388_v21 = vpop.f32.mrf.mxu2  ;;  %964 = vpow2.f32 %v940_v17  ;;  %v431_v56 = vsel %vm1334_vm5, %v1296_v54, %v427_v41  ;;  %v1367_v17 = vld [vmem:[%s1438_s8] sm:$0xf]  ;;  %s1175_s8 = smov [#allocation13]  }
  0xde   :  { %v389_v25 = vadd.f32 %v388_v21, %v246_v14  ;;  %v446_v48 = vsel %vm1321_vm4, %v1299_v58, %v442_v29  ;;  %v108_v58 = vld [vmem:[#allocation5] sm:$0xff]  ;;  %v436_v61 = vsel %vm433_vm7, %v435_v52, %v431_v56  ;;  %v608_v19 = vperm.slane %v1367_v17, 0  ;;  %s912_s29 = sshll.u32 %s1175_s8, 4  ;;  %s913_s29 = int_to_ptr.vmem [resolvable:$true] %s912_s29 }
  0xdf   :  { %v408_v28 = vpop.f32.mrf.mxu3  ;;  %v451_v59 = vsel %vm1341_vm6, %v450_v44, %v446_v48  ;;  %v609_v26 = vperm.slane %v1367_v17, 1  ;;  %v610_v29 = vperm.slane %v1367_v17, 2  ;;  %v847_v44 = vld [vmem:[%s1439_s9 + $0x20] sm:$0xff]  ;;  %v845_v48 = vld [vmem:[%s1439_s9 + $0x10] sm:$0xff]  ;;  %v611_v53 = vperm.slane %v1367_v17, 3 }
  0xe0   :  { %v409_v35 = vadd.f32 %v408_v28, %v389_v25  ;;  %v469_v62 = vmul.f32 %v451_v59, %v108_v58 }
  0xe2   :  { %966 = vtanh.f32 %v409_v35  ;;  %v849_v35 = vld [vmem:[%s1439_s9 + $0x30] sm:$0xff]  ;;  %s1174_s9 = smov [#allocation11]  }
  0xe3   :  { %v965_v51 = vpop.eup %964  ;;  %s899_s25 = sshll.u32 %s1174_s9, 4  ;;  %s900_s25 = int_to_ptr.vmem [resolvable:$true] %s899_s25 }
  0xe4   :  { %v422_v55 = vadd.f32 1.0, %v965_v51 }
  0xe6   :  { %968 = vrcp.f32 %v422_v55  ;;  %v464_v4 = vand.u32 2147483648, %v422_v55  ;;  %v462_v6 = vand.u32 2147483647, %v422_v55  ;;  %vm458_vm9 = vweird.f32 %v422_v55 }
  0xe8   :  { %v967_v60 = vpop.eup %966  ;;  %v465_v8 = vor.u32 1.1754944e-38, %v464_v4  ;;  %vm463_vm11 = vcmp.eq.f32.partialorder %v462_v6, 8.507059e+37 }
  0xe9   :  { %v470_v63 = vmul.f32 %v967_v60, %v436_v61 }
  0xeb   :  { %v471_v54 = vadd.f32 %v470_v63, %v469_v62 }
  0xec   :  { %v969_v0 = vpop.eup %968 }
  0xed   :  { %475 = vst [vmem:[#allocation13] sm:$0xff] %v471_v54  ;;  %v454_v1 = vmul.f32 %v969_v0, %v422_v55  ;;  %970 = vtanh.f32 %v471_v54  ;;  %vm459_vm8 = vweird.f32 %v969_v0 }
  0xee   :  { %vm460_vm10 = vmor %vm458_vm9, %vm459_vm8 }
  0xef   :  { %v455_v3 = vsub.f32 1.0, %v454_v1 }
  0xf1   :  { %v456_v5 = vmul.f32 %v969_v0, %v455_v3 }
  0xf3   :  { %v457_v7 = vadd.f32 %v969_v0, %v456_v5  ;;  %v971_v11 = vpop.eup %970 }
  0xf5   :  { %v461_v9 = vsel %vm460_vm10, %v969_v0, %v457_v7 }
  0xf6   :  { %v466_v12 = vsel %vm463_vm11, %v465_v8, %v461_v9 }
  0xf7   :  { %v473_v13 = vmul.f32 %v971_v11, %v466_v12 }
  0xf9   :  { %v477_v14 = vmul.f32 %v476_v2, %v473_v13  ;;  %474 = vst [vmem:[#allocation11] sm:$0xff] %v473_v13 }
  0xfb   :  { %632 = vmatmul.f32.vlgmr.msra.gmra.mxu0 %v477_v14  ;;  %672 = vmatmul.f32.vlgmr.msra.gmra.mxu2 %v477_v14 }
  0xfc   :  { %863 = vmatpush.msra.mxu0 %v858_v10 }
  0xfe   :  { %864 = vmatpush.msra.mxu0 %v857_v15 }
 0x100   :  { %865 = vmatpush.msra.mxu0 %v856_v16  ;;  %v109_v16 = vld [vmem:[#allocation5 + $0x8] sm:$0xff] }
 0x102   :  { %866 = vmatpush.msra.mxu0 %v855_v18 }
 0x103   :  { %712 = vmatmul.f32.vlgmr.msrb.gmra.mxu0 %v477_v14  ;;  %752 = vmatmul.f32.vlgmr.msrb.gmra.mxu2 %v477_v14  ;;  %v653_v21 = vpop.f32.mrf.mxu1 }
 0x104   :  { %867 = vmatpush.msra.mxu0 %v854_v20 }
 0x106   :  { %868 = vmatpush.msra.mxu0 %v853_v37 }
 0x108   :  { %869 = vmatpush.msra.mxu0 %v852_v24 }
 0x10a   :  { %870 = vmatpush.msra.mxu0 %v851_v27 }
 0x10b   :  { %v693_v32 = vpop.f32.mrf.mxu3 }
 0x10c   :  { %871 = vmatpush.msra.mxu0 %v850_v30 }
 0x10e   :  { %872 = vmatpush.msra.mxu0 %v849_v35 }
 0x110   :  { %873 = vmatpush.msra.mxu0 %v848_v42 }
 0x112   :  { %874 = vmatpush.msra.mxu0 %v847_v44 }
 0x114   :  { %875 = vmatpush.msra.mxu0 %v846_v45 }
 0x116   :  { %876 = vmatpush.msra.mxu0 %v845_v48 }
 0x118   :  { %877 = vmatpush.msra.mxu0 %v844_v33 }
 0x11a   :  { %878 = vmatpush.msra.mxu0 %v843_v50 }
 0x14e   :  { %v733_v39 = vpop.f32.mrf.mxu1 }
 0x158   :  { %v773_v62 = vpop.f32.mrf.mxu3 }
 0x178   :  { %v633_v22 = vpop.f32.mrf.mxu0 }
 0x179   :  { %v634_v23 = vadd.f32 %v633_v22, %v608_v19 }
 0x17b   :  { %v654_v25 = vadd.f32 %v653_v21, %v634_v23 }
 0x17d   :  { %v941_v28 = vmul.f32 -1.442695, %v654_v25 }
 0x17e   :  { %v673_v31 = vpop.f32.mrf.mxu2 }
 0x17f   :  { %972 = vpow2.f32 %v941_v28  ;;  %v674_v34 = vadd.f32 %v673_v31, %v609_v26 }
 0x180   :  { %v713_v36 = vpop.f32.mrf.mxu0 }
 0x181   :  { %v694_v40 = vadd.f32 %v693_v32, %v674_v34  ;;  %v714_v41 = vadd.f32 %v713_v36, %v610_v29  ;;  %v955_v32 = vld [vmem:[%s1440_s10] ss:$0 sm:$0xff] }
 0x183   :  { %v942_v38 = vmul.f32 -1.442695, %v694_v40  ;;  %v734_v43 = vadd.f32 %v733_v39, %v714_v41 }
 0x185   :  { %v973_v46 = vpop.eup %972  ;;  %974 = vpow2.f32 %v942_v38  ;;  %v943_v47 = vmul.f32 -1.442695, %v734_v43 }
 0x186   :  { %v785_v49 = vadd.f32 1.0, %v973_v46  ;;  %v753_v56 = vpop.f32.mrf.mxu2 }
 0x187   :  { %976 = vpow2.f32 %v943_v47  ;;  %v754_v60 = vadd.f32 %v753_v56, %v611_v53 }
 0x188   :  { %978 = vrcp.f32 %v785_v49  ;;  %v799_v5 = vand.u32 2147483648, %v785_v49  ;;  %vm793_vm13 = vweird.f32 %v785_v49  ;;  %v797_v8 = vand.u32 2147483647, %v785_v49 }
 0x189   :  { %v774_v0 = vadd.f32 %v773_v62, %v754_v60 }
 0x18a   :  { %v800_v14 = vor.u32 1.1754944e-38, %v799_v5  ;;  %vm798_vm1 = vcmp.eq.f32.partialorder %v797_v8, 8.507059e+37 }
 0x18b   :  { %v975_v51 = vpop.eup %974 }
 0x18c   :  { %v786_v52 = vadd.f32 1.0, %v975_v51 }
 0x18d   :  { %v977_v55 = vpop.eup %976 }
 0x18e   :  { %v979_v57 = vpop.eup %978  ;;  %980 = vrcp.f32 %v786_v52  ;;  %v787_v58 = vadd.f32 1.0, %v977_v55  ;;  %v814_v9 = vand.u32 2147483648, %v786_v52  ;;  %v812_v2 = vand.u32 2147483647, %v786_v52 }
 0x18f   :  { %v789_v59 = vmul.f32 %v979_v57, %v785_v49  ;;  %vm794_vm12 = vweird.f32 %v979_v57  ;;  %vm808_vm0 = vweird.f32 %v786_v52 }
 0x190   :  { %982 = vrcp.f32 %v787_v58  ;;  %vm795_vm14 = vmor %vm793_vm13, %vm794_vm12  ;;  %v815_v15 = vor.u32 1.1754944e-38, %v814_v9  ;;  %vm813_vm3 = vcmp.eq.f32.partialorder %v812_v2, 8.507059e+37  ;;  %v829_v25 = vand.u32 2147483648, %v787_v58 }
 0x191   :  { %v790_v61 = vsub.f32 1.0, %v789_v59  ;;  %984 = vtanh.f32 %v774_v0  ;;  %vm823_vm5 = vweird.f32 %v787_v58  ;;  %v827_v26 = vand.u32 2147483647, %v787_v58 }
 0x192   :  { %v830_v28 = vor.u32 1.1754944e-38, %v829_v25 }
 0x193   :  { %v791_v63 = vmul.f32 %v979_v57, %v790_v61  ;;  %vm828_vm7 = vcmp.eq.f32.partialorder %v827_v26, 8.507059e+37 }
 0x194   :  { %v981_v54 = vpop.eup %980 }
 0x195   :  { %v804_v1 = vmul.f32 %v981_v54, %v786_v52  ;;  %v792_v3 = vadd.f32 %v979_v57, %v791_v63  ;;  %vm809_vm15 = vweird.f32 %v981_v54 }
 0x196   :  { %v983_v4 = vpop.eup %982  ;;  %vm810_vm2 = vmor %vm808_vm0, %vm809_vm15 }
 0x197   :  { %v805_v6 = vsub.f32 1.0, %v804_v1  ;;  %v819_v7 = vmul.f32 %v983_v4, %v787_v58  ;;  %v796_v12 = vsel %vm795_vm14, %v979_v57, %v792_v3  ;;  %v985_v19 = vpop.eup %984  ;;  %vm824_vm4 = vweird.f32 %v983_v4 }
 0x198   :  { %v801_v17 = vsel %vm798_vm1, %v800_v14, %v796_v12  ;;  %vm825_vm6 = vmor %vm823_vm5, %vm824_vm4 }
 0x199   :  { %v806_v11 = vmul.f32 %v981_v54, %v805_v6  ;;  %v820_v13 = vsub.f32 1.0, %v819_v7  ;;  %v835_v22 = vmul.f32 %v985_v19, %v801_v17 }
 0x19b   :  { %v807_v10 = vadd.f32 %v981_v54, %v806_v11  ;;  %v821_v21 = vmul.f32 %v983_v4, %v820_v13 }
 0x19d   :  { %v811_v18 = vsel %vm810_vm2, %v981_v54, %v807_v10  ;;  %v822_v24 = vadd.f32 %v983_v4, %v821_v21 }
 0x19e   :  { %v816_v20 = vsel %vm813_vm3, %v815_v15, %v811_v18 }
 0x19f   :  { %v834_v37 = vmul.f32 %v816_v20, %v109_v16  ;;  %v826_v27 = vsel %vm825_vm6, %v983_v4, %v822_v24 }
 0x1a0   :  { %v831_v30 = vsel %vm828_vm7, %v830_v28, %v826_v27 }
 0x1a1   :  { %v836_v23 = vadd.f32 %v835_v22, %v834_v37 }
 0x1a3   :  { %986 = vtanh.f32 %v836_v23  ;;  %842 = vst [vmem:[#allocation13 + $0x8] sm:$0xff] %v836_v23 }
 0x1a9   :  { %v987_v29 = vpop.eup %986 }
 0x1aa   :  { %v838_v31 = vmul.f32 %v987_v29, %v831_v30 }
 0x1ac   :  { %879 = vmatmul.f32.vlgmr.msra.gmra.mxu0 %v838_v31  ;;  %840 = vst [vmem:[#allocation11 + $0x8] sm:$0xff] %v838_v31 }
 0x1ad   :  { %907 = dma.vmem_to_hbm [thread:$0]  %s900_s25, 256, %s902_s28, [#allocation12], %s1167_s16, %s1167_s16, %s1168_s17  }
 0x1ae   :  { %920 = dma.vmem_to_hbm [thread:$0]  %s913_s29, 256, %s915_s30, [#allocation12], %s1167_s16, %s1167_s16, %s1168_s17  }
 0x229   :  { %v880_v34 = vpop.f32.mrf.mxu0 }
 0x22a   :  { %v881_v35 = vadd.f32 %v955_v32, %v880_v34 }
 0x22c   :  { %883 = vst [vmem:[#allocation10] sm:$0xff] %v881_v35 }
 0x22d   :  { %894 = dma.vmem_to_hbm [thread:$0]  %s890_s3, 128, %s892_s18, [#allocation4]  }
 0x22e   :  { %1162 = dma.done.wait [#allocation4], 128  }
 0x22f   :  { %1163 = vsyncadd [#allocation4], 4294967168 }
 0x230   :  { %1164 = dma.done.wait [#allocation12], 512  }
 0x231   :  { %1165 = vsyncadd [#allocation12], 4294966784 }
 0x232   :  { %933 = vsyncpa [#allocation3], 1 }
 0x233   :  { %934 = vsyncpa [#allocation6], 1 }
 0x234   :  { %935 = vsyncpa [#allocation9], 1 }
 0x235   :  { %936 = vsyncpa [#allocation4], 1 }
 0x236   :  { %937 = vsyncpa [#allocation12], 1 }

</bundles_post_ra>
